<compile_context>
chip_gen: v6e
topology: v6e:2x2x1
jax: 0.10.0
libtpu: 0.0.40
codegen_flags: <defaults>
</compile_context>

<pallas_src>
import jax
import jax.numpy as jnp
from jax.experimental import pallas as pl
from jax.experimental.pallas import tpu as pltpu

LN_EPS = 1e-5  # F.layer_norm default


def _round_up(x, m):
    return ((x + m - 1) // m) * m


def _tpu_config():
    """Generation-aware tile sizes and VMEM limit (tm is the roofline knob)."""
    kind = ""
    try:
        kind = jax.devices()[0].device_kind.lower()
    except Exception:  # pragma: no cover - CPU/interpret fallback
        pass
    # Conservative default: fits v7x's 64 MiB VMEM, decent everywhere.
    cfg = dict(tm=512, tn=256, vmem_limit=48 * 1024 * 1024, split_rows=False)
    if ("v5 lite" in kind) or ("v5e" in kind) or ("v5litepod" in kind):
        # v5e: ridge ~240 f/B -> tm=256-512 already MXU-bound; spend VMEM on tn.
        cfg = dict(tm=512, tn=512, vmem_limit=100 * 1024 * 1024,
                   split_rows=False)
    elif "v6" in kind:
        # v6e: 128 MiB VMEM, ridge ~650 f/B -> tm>=768 turns it MXU-bound.
        cfg = dict(tm=1024, tn=256, vmem_limit=104 * 1024 * 1024,
                   split_rows=False)
    elif "v7" in kind:
        # v7x: 64 MiB VMEM, 2 TCs -> keep >=2 row tiles, modest vmem limit.
        cfg = dict(tm=512, tn=256, vmem_limit=48 * 1024 * 1024,
                   split_rows=True)
    return cfg


def _ffn_kernel(x_ref, g_ref, b_ref, w1_ref, b1_ref, w2_ref, b2_ref,
                o_ref, xn_ref):
    # Grid = (row_tiles, inner_tiles); inner axis is the reduction axis.
    j = pl.program_id(1)

    @pl.when(j == 0)
    def _init():
        # LayerNorm over the feature dim, computed once per row tile (f32).
        x = x_ref[...].astype(jnp.float32)                     # (tm, dim)
        mean = jnp.mean(x, axis=-1, keepdims=True)
        xc = x - mean
        var = jnp.mean(xc * xc, axis=-1, keepdims=True)
        xn = xc * jax.lax.rsqrt(var + LN_EPS)
        xn = xn * g_ref[...].astype(jnp.float32) + b_ref[...].astype(jnp.float32)
        xn_ref[...] = xn.astype(xn_ref.dtype)                  # bf16 for MXU
        # Accumulate directly into the (f32) output block, seeded with b2.
        o_ref[...] = jnp.broadcast_to(b2_ref[...].astype(o_ref.dtype),
                                      o_ref.shape)

    # Linear(dim -> inner tile) + GELU (tanh form -> EUP slot).
    h = jnp.dot(xn_ref[...], w1_ref[...],
                preferred_element_type=jnp.float32)            # (tm, tn) f32
    h = h + b1_ref[...].astype(jnp.float32)
    h = jax.nn.gelu(h, approximate=True)

    # Partial Linear(inner tile -> dim), accumulated in the resident output.
    o_ref[...] += jnp.dot(h.astype(w2_ref.dtype), w2_ref[...],
                          preferred_element_type=jnp.float32)


def prepare_params(params, *, tn=None):
    """One-time weight prep (bf16 cast + inner-dim padding + reshapes).

    Hoisted out of the per-call hot path so the weight matrices are not
    re-read / re-written in HBM on every forward call.
    """
    cfg = _tpu_config()
    tn = cfg["tn"] if tn is None else tn
    tn = _round_up(max(int(tn), 128), 128)          # enforce lane alignment

    dim, inner = params["w1"].shape
    tn_eff = min(tn, _round_up(inner, 128))
    inner_pad = _round_up(inner, tn_eff)

    w1 = params["w1"].astype(jnp.bfloat16)
    w2 = params["w2"].astype(jnp.bfloat16)
    b1 = params["b1"].astype(jnp.float32)
    if inner_pad != inner:  # zero-padded inner columns contribute exactly 0
        w1 = jnp.pad(w1, ((0, 0), (0, inner_pad - inner)))
        w2 = jnp.pad(w2, ((0, inner_pad - inner), (0, 0)))
        b1 = jnp.pad(b1, ((0, inner_pad - inner),))

    return {
        "gamma": params["gamma"].reshape(1, dim).astype(jnp.float32),
        "beta": params["beta"].reshape(1, dim).astype(jnp.float32),
        "w1": w1,                                   # (dim, inner_pad) bf16
        "b1": b1.reshape(1, inner_pad),             # f32
        "w2": w2,                                   # (inner_pad, dim) bf16
        "b2": params["b2"].reshape(1, dim).astype(jnp.float32),
        "dim": dim,
        "inner_pad": inner_pad,
        "tn": tn_eff,
    }


def feed_forward(x, params, *, tm=None):
    """x: (batch, seq, dim). params: raw (init_params) or prepared dict."""
    if "inner_pad" not in params:          # allow raw params; prep once here.
        params = prepare_params(params)

    cfg = _tpu_config()
    tm = cfg["tm"] if tm is None else tm
    tm = _round_up(max(int(tm), 8), 8)              # enforce sublane alignment

    batch, seq, dim = x.shape
    assert dim == params["dim"]
    tn_eff = params["tn"]
    inner_pad = params["inner_pad"]
    n = batch * seq

    # Row tiling: pad token count to a multiple of the row tile (sublane = 8).
    tm_eff = min(tm, _round_up(n, 8))
    if cfg["split_rows"] and n > 8:
        # v7x: keep >=2 row tiles so both TensorCores get a 'parallel' slice.
        tm_eff = min(tm_eff, _round_up((n + 1) // 2, 8))
    n_pad = _round_up(n, tm_eff)

    x2d = x.reshape(n, dim)
    if n_pad != n:
        # NOTE: zero-padded rows hit LayerNorm with var=0 -> rsqrt(eps); they
        # produce finite garbage (~beta) that is sliced off below by [:n].
        # This is intentional -- do not remove the final slice.
        x2d = jnp.pad(x2d, ((0, n_pad - n), (0, 0)))

    grid = (n_pad // tm_eff, inner_pad // tn_eff)

    out = pl.pallas_call(
        _ffn_kernel,
        out_shape=jax.ShapeDtypeStruct((n_pad, dim), jnp.float32),
        grid_spec=pltpu.PrefetchScalarGridSpec(
            num_scalar_prefetch=0,
            grid=grid,
            in_specs=[
                # x rows: only consumed at j==0 -> single buffer saves VMEM.
                pl.BlockSpec((tm_eff, dim), lambda i, j: (i, 0),
                             pipeline_mode=pl.Buffered(1)),
                pl.BlockSpec((1, dim), lambda i, j: (0, 0),
                             pipeline_mode=pl.Buffered(1)),            # gamma
                pl.BlockSpec((1, dim), lambda i, j: (0, 0),
                             pipeline_mode=pl.Buffered(1)),            # beta
                pl.BlockSpec((dim, tn_eff), lambda i, j: (0, j)),      # w1 tile
                pl.BlockSpec((1, tn_eff), lambda i, j: (0, j)),        # b1 tile
                pl.BlockSpec((tn_eff, dim), lambda i, j: (j, 0)),      # w2 tile
                pl.BlockSpec((1, dim), lambda i, j: (0, 0),
                             pipeline_mode=pl.Buffered(1)),            # b2
            ],
            # Output block index is constant along j -> resident accumulator.
            out_specs=pl.BlockSpec((tm_eff, dim), lambda i, j: (i, 0)),
            scratch_shapes=[
                pltpu.VMEM((tm_eff, dim), jnp.bfloat16),  # normalized rows
            ]),
        compiler_params=pltpu.CompilerParams(
            dimension_semantics=("parallel", "arbitrary"),
            vmem_limit_bytes=cfg["vmem_limit"]),
    )(x2d, params["gamma"], params["beta"], params["w1"], params["b1"],
      params["w2"], params["b2"])

    return out[:n].reshape(batch, seq, dim).astype(x.dtype)


def init_params(key, dim, mult=4):
    inner = int(dim * mult)
    k1, k2, k3, k4 = jax.random.split(key, 4)
    # nn.Linear default init: U(-1/sqrt(fan_in), 1/sqrt(fan_in))
    lim1 = 1.0 / jnp.sqrt(dim)
    lim2 = 1.0 / jnp.sqrt(inner)
    return {
        "gamma": jnp.ones((dim,), jnp.float32),
        "beta": jnp.zeros((dim,), jnp.float32),
        # stored pre-transposed: (in, out)
        "w1": jax.random.uniform(k1, (dim, inner), jnp.float32, -lim1, lim1),
        "b1": jax.random.uniform(k2, (inner,), jnp.float32, -lim1, lim1),
        "w2": jax.random.uniform(k3, (inner, dim), jnp.float32, -lim2, lim2),
        "b2": jax.random.uniform(k4, (dim,), jnp.float32, -lim2, lim2),
    }


def feed_forward_ref(x, p):
    """Pure-f32 reference matching the PyTorch module (exact-erf GELU)."""
    mean = jnp.mean(x, axis=-1, keepdims=True)
    var = jnp.mean((x - mean) ** 2, axis=-1, keepdims=True)
    xn = (x - mean) / jnp.sqrt(var + LN_EPS) * p["gamma"] + p["beta"]
    h = jax.nn.gelu(xn @ p["w1"] + p["b1"], approximate=False)
    return h @ p["w2"] + p["b2"]


if __name__ == "__main__":
    key = jax.random.PRNGKey(0)
    kx, kp = jax.random.split(key)

    # Small but lane-dense demo sizes: dim multiple of 128, inner = 4*dim.
    batch, seq, dim = 2, 8, 128
    x = jax.random.normal(kx, (batch, seq, dim), jnp.float32)
    params = init_params(kp, dim, mult=4)

    prepped = prepare_params(params)          # one-time weight cast/pad
    out = jax.block_until_ready(feed_forward(x, prepped))
    ref = feed_forward_ref(x, params)

    assert out.shape == (batch, seq, dim)
    # bf16 MXU operands + tanh-GELU introduce small drift vs pure-f32/erf ref.
    assert jnp.allclose(out, ref, atol=5e-2, rtol=5e-2), (
        f"mismatch vs reference, max abs err={jnp.max(jnp.abs(out - ref))}")
    print("KERNEL_OK")
</pallas_src>

<mosaic_0001>
module attributes {stable_mosaic.version = 11 : i64} {
  func.func @_ffn_kernel(%arg0: i32, %arg1: i32, %arg2: memref<16x128xf32, #tpu.memory_space<vmem>>, %arg3: memref<1x128xf32, #tpu.memory_space<vmem>>, %arg4: memref<1x128xf32, #tpu.memory_space<vmem>>, %arg5: memref<128x256xbf16, #tpu.memory_space<vmem>>, %arg6: memref<1x256xf32, #tpu.memory_space<vmem>>, %arg7: memref<256x128xbf16, #tpu.memory_space<vmem>>, %arg8: memref<1x128xf32, #tpu.memory_space<vmem>>, %arg9: memref<16x128xf32, #tpu.memory_space<vmem>>, %arg10: memref<16x128xbf16, #tpu.memory_space<vmem>>) attributes {dimension_semantics = [#tpu.dimension_semantics<parallel>, #tpu.dimension_semantics<arbitrary>], iteration_bounds = array<i64: 1, 2>, scalar_prefetch = 0 : i64, scratch_operands = 1 : i64, tpu.core_type = #tpu.core_type<tc>, window_params = [{pipeline_mode = #tpu.pipeline_mode<synchronous>, transform_indices = @transform_0, window_bounds = array<i64: 16, 128>}, {pipeline_mode = #tpu.pipeline_mode<synchronous>, transform_indices = @transform_1, window_bounds = array<i64: 1, 128>}, {pipeline_mode = #tpu.pipeline_mode<synchronous>, transform_indices = @transform_2, window_bounds = array<i64: 1, 128>}, {transform_indices = @transform_3, window_bounds = array<i64: 128, 256>}, {transform_indices = @transform_4, window_bounds = array<i64: 1, 256>}, {transform_indices = @transform_5, window_bounds = array<i64: 256, 128>}, {pipeline_mode = #tpu.pipeline_mode<synchronous>, transform_indices = @transform_6, window_bounds = array<i64: 1, 128>}, {transform_indices = @transform_7, window_bounds = array<i64: 16, 128>}]} {
    %c0_i32 = arith.constant 0 : i32
    %0 = arith.cmpi eq, %arg1, %c0_i32 : i32
    %1 = arith.extui %0 : i1 to i32
    %c0_i32_0 = arith.constant 0 : i32
    %2 = arith.cmpi ne, %1, %c0_i32_0 : i32
    scf.if %2 {
      %c0_17 = arith.constant 0 : index
      %c0_18 = arith.constant 0 : index
      %28 = vector.load %arg2[%c0_17, %c0_18] : memref<16x128xf32, #tpu.memory_space<vmem>>, vector<16x128xf32>
      %cst_19 = arith.constant dense<0.000000e+00> : vector<16xf32>
      %29 = vector.multi_reduction <add>, %28, %cst_19 [1] : vector<16x128xf32> to vector<16xf32>
      %30 = vector.shape_cast %29 : vector<16xf32> to vector<16x1xf32>
      %cst_20 = arith.constant 1.280000e+02 : f32
      %31 = vector.broadcast %cst_20 : f32 to vector<16x1xf32>
      %32 = arith.divf %30, %31 : vector<16x1xf32>
      %33 = vector.broadcast %32 : vector<16x1xf32> to vector<16x128xf32>
      %34 = arith.subf %28, %33 : vector<16x128xf32>
      %35 = arith.mulf %34, %34 : vector<16x128xf32>
      %cst_21 = arith.constant dense<0.000000e+00> : vector<16xf32>
      %36 = vector.multi_reduction <add>, %35, %cst_21 [1] : vector<16x128xf32> to vector<16xf32>
      %37 = vector.shape_cast %36 : vector<16xf32> to vector<16x1xf32>
      %cst_22 = arith.constant 1.280000e+02 : f32
      %38 = vector.broadcast %cst_22 : f32 to vector<16x1xf32>
      %39 = arith.divf %37, %38 : vector<16x1xf32>
      %cst_23 = arith.constant 9.99999974E-6 : f32
      %40 = vector.broadcast %cst_23 : f32 to vector<16x1xf32>
      %41 = arith.addf %39, %40 : vector<16x1xf32>
      %42 = math.rsqrt %41 : vector<16x1xf32>
      %43 = vector.broadcast %42 : vector<16x1xf32> to vector<16x128xf32>
      %44 = arith.mulf %34, %43 : vector<16x128xf32>
      %c0_24 = arith.constant 0 : index
      %c0_25 = arith.constant 0 : index
      %45 = vector.load %arg3[%c0_24, %c0_25] : memref<1x128xf32, #tpu.memory_space<vmem>>, vector<1x128xf32>
      %46 = vector.broadcast %45 : vector<1x128xf32> to vector<16x128xf32>
      %47 = arith.mulf %44, %46 : vector<16x128xf32>
      %c0_26 = arith.constant 0 : index
      %c0_27 = arith.constant 0 : index
      %48 = vector.load %arg4[%c0_26, %c0_27] : memref<1x128xf32, #tpu.memory_space<vmem>>, vector<1x128xf32>
      %49 = vector.broadcast %48 : vector<1x128xf32> to vector<16x128xf32>
      %50 = arith.addf %47, %49 : vector<16x128xf32>
      %51 = arith.truncf %50 : vector<16x128xf32> to vector<16x128xbf16>
      %c0_28 = arith.constant 0 : index
      %c0_29 = arith.constant 0 : index
      %52 = vector.load %arg10[%c0_28, %c0_29] : memref<16x128xbf16, #tpu.memory_space<vmem>>, vector<16x128xbf16>
      tpu.vector_store %arg10[%c0_28, %c0_29], %51 {strides = array<i32>} : memref<16x128xbf16, #tpu.memory_space<vmem>>, vector<16x128xbf16>,
      %c0_30 = arith.constant 0 : index
      %c0_31 = arith.constant 0 : index
      %53 = vector.load %arg8[%c0_30, %c0_31] : memref<1x128xf32, #tpu.memory_space<vmem>>, vector<1x128xf32>
      %54 = vector.shape_cast %53 : vector<1x128xf32> to vector<1x128xf32>
      %55 = vector.broadcast %54 : vector<1x128xf32> to vector<16x128xf32>
      %c0_32 = arith.constant 0 : index
      %c0_33 = arith.constant 0 : index
      %56 = vector.load %arg9[%c0_32, %c0_33] : memref<16x128xf32, #tpu.memory_space<vmem>>, vector<16x128xf32>
      tpu.vector_store %arg9[%c0_32, %c0_33], %55 {strides = array<i32>} : memref<16x128xf32, #tpu.memory_space<vmem>>, vector<16x128xf32>,
    } else {
    }
    %c0 = arith.constant 0 : index
    %c0_1 = arith.constant 0 : index
    %3 = vector.load %arg10[%c0, %c0_1] : memref<16x128xbf16, #tpu.memory_space<vmem>>, vector<16x128xbf16>
    %c0_2 = arith.constant 0 : index
    %c0_3 = arith.constant 0 : index
    %4 = vector.load %arg5[%c0_2, %c0_3] : memref<128x256xbf16, #tpu.memory_space<vmem>>, vector<128x256xbf16>
    %cst = arith.constant dense<0.000000e+00> : vector<16x256xf32>
    %5 = tpu.matmul %3, %4, %cst {dimension_numbers = #tpu.dot_dimension_numbers<[1], [0], [0], [1], [0, 0, 1, 1], [], []>} : vector<16x128xbf16>, vector<128x256xbf16>, vector<16x256xf32> -> vector<16x256xf32>
    %c0_4 = arith.constant 0 : index
    %c0_5 = arith.constant 0 : index
    %6 = vector.load %arg6[%c0_4, %c0_5] : memref<1x256xf32, #tpu.memory_space<vmem>>, vector<1x256xf32>
    %7 = vector.broadcast %6 : vector<1x256xf32> to vector<16x256xf32>
    %8 = arith.addf %5, %7 : vector<16x256xf32>
    %9 = arith.mulf %8, %8 : vector<16x256xf32>
    %10 = arith.mulf %8, %9 : vector<16x256xf32>
    %cst_6 = arith.constant 4.471500e-02 : f32
    %11 = vector.broadcast %cst_6 : f32 to vector<16x256xf32>
    %12 = arith.mulf %11, %10 : vector<16x256xf32>
    %13 = arith.addf %8, %12 : vector<16x256xf32>
    %cst_7 = arith.constant 0.797884583 : f32
    %14 = vector.broadcast %cst_7 : f32 to vector<16x256xf32>
    %15 = arith.mulf %14, %13 : vector<16x256xf32>
    %16 = math.tanh %15 : vector<16x256xf32>
    %cst_8 = arith.constant 1.000000e+00 : f32
    %17 = vector.broadcast %cst_8 : f32 to vector<16x256xf32>
    %18 = arith.addf %17, %16 : vector<16x256xf32>
    %cst_9 = arith.constant 5.000000e-01 : f32
    %19 = vector.broadcast %cst_9 : f32 to vector<16x256xf32>
    %20 = arith.mulf %19, %18 : vector<16x256xf32>
    %21 = arith.mulf %8, %20 : vector<16x256xf32>
    %c0_10 = arith.constant 0 : index
    %c0_11 = arith.constant 0 : index
    %22 = vector.load %arg9[%c0_10, %c0_11] : memref<16x128xf32, #tpu.memory_space<vmem>>, vector<16x128xf32>
    %23 = arith.truncf %21 : vector<16x256xf32> to vector<16x256xbf16>
    %c0_12 = arith.constant 0 : index
    %c0_13 = arith.constant 0 : index
    %24 = vector.load %arg7[%c0_12, %c0_13] : memref<256x128xbf16, #tpu.memory_space<vmem>>, vector<256x128xbf16>
    %cst_14 = arith.constant dense<0.000000e+00> : vector<16x128xf32>
    %25 = tpu.matmul %23, %24, %cst_14 {dimension_numbers = #tpu.dot_dimension_numbers<[1], [0], [0], [1], [0, 0, 1, 1], [], []>} : vector<16x256xbf16>, vector<256x128xbf16>, vector<16x128xf32> -> vector<16x128xf32>
    %26 = arith.addf %22, %25 : vector<16x128xf32>
    %c0_15 = arith.constant 0 : index
    %c0_16 = arith.constant 0 : index
    %27 = vector.load %arg9[%c0_15, %c0_16] : memref<16x128xf32, #tpu.memory_space<vmem>>, vector<16x128xf32>
    tpu.vector_store %arg9[%c0_15, %c0_16], %26 {strides = array<i32>} : memref<16x128xf32, #tpu.memory_space<vmem>>, vector<16x128xf32>,
    return
  }
  func.func @transform_0(%arg0: i32, %arg1: i32) -> (i32, i32) {
    %c0_i32 = arith.constant 0 : i32
    %c0_i32_0 = arith.constant 0 : i32
    return %arg0, %c0_i32 : i32, i32
  }
  func.func @transform_1(%arg0: i32, %arg1: i32) -> (i32, i32) {
    %c0_i32 = arith.constant 0 : i32
    %c0_i32_0 = arith.constant 0 : i32
    %c0_i32_1 = arith.constant 0 : i32
    return %c0_i32, %c0_i32_0 : i32, i32
  }
  func.func @transform_2(%arg0: i32, %arg1: i32) -> (i32, i32) {
    %c0_i32 = arith.constant 0 : i32
    %c0_i32_0 = arith.constant 0 : i32
    %c0_i32_1 = arith.constant 0 : i32
    return %c0_i32, %c0_i32_0 : i32, i32
  }
  func.func @transform_3(%arg0: i32, %arg1: i32) -> (i32, i32) {
    %c0_i32 = arith.constant 0 : i32
    %c0_i32_0 = arith.constant 0 : i32
    return %c0_i32, %arg1 : i32, i32
  }
  func.func @transform_4(%arg0: i32, %arg1: i32) -> (i32, i32) {
    %c0_i32 = arith.constant 0 : i32
    %c0_i32_0 = arith.constant 0 : i32
    return %c0_i32, %arg1 : i32, i32
  }
  func.func @transform_5(%arg0: i32, %arg1: i32) -> (i32, i32) {
    %c0_i32 = arith.constant 0 : i32
    %c0_i32_0 = arith.constant 0 : i32
    return %arg1, %c0_i32 : i32, i32
  }
  func.func @transform_6(%arg0: i32, %arg1: i32) -> (i32, i32) {
    %c0_i32 = arith.constant 0 : i32
    %c0_i32_0 = arith.constant 0 : i32
    %c0_i32_1 = arith.constant 0 : i32
    return %c0_i32, %c0_i32_0 : i32, i32
  }
  func.func @transform_7(%arg0: i32, %arg1: i32) -> (i32, i32) {
    %c0_i32 = arith.constant 0 : i32
    %c0_i32_0 = arith.constant 0 : i32
    return %arg0, %c0_i32 : i32, i32
  }
}

</mosaic_0001>

<bundles_post_ra>
// kernel: tpu_custom_call.1
= control target key start
LH: loop header
LB: loop body
LE: loop exit
PB: predicated region body
PF: predicated region fallthrough
CT: control target
= control target key end

     0   :  { %12 = vsyncpa [#allocation4], 0  ;;  %s1608_s0 = inlined_call_operand.hbm [shape: f32[16,128], index: 0, kind: input, shape index: {}]   ;;  %s1609_s1 = inlined_call_operand.vmem [shape: f32[1,128], index: 1, kind: input, shape index: {}]   ;;  %s1610_s2 = inlined_call_operand.vmem [shape: f32[1,128], index: 2, kind: input, shape index: {}]   ;;  %s1611_s3 = inlined_call_operand.hbm [shape: bf16[128,512], index: 3, kind: input, shape index: {}]   ;;  %s1612_s4 = inlined_call_operand.vmem [shape: f32[1,512], index: 4, kind: input, shape index: {}]   ;;  %s1613_s5 = inlined_call_operand.hbm [shape: bf16[512,128], index: 5, kind: input, shape index: {}]   ;;  %s1614_s6 = inlined_call_operand.vmem [shape: f32[1,128], index: 6, kind: input, shape index: {}]   ;;  %s1615_s7 = inlined_call_operand.hbm [shape: f32[16,128], index: 7, kind: output, shape index: {}]  }
   0x1   :  { %13 = vsyncpa [#allocation7], 0 }
   0x2   :  { %15 = vsyncpa [#allocation7 + $0x1], 0 }
   0x3   :  { %16 = vsyncpa [#allocation5], 0  ;;  %s1386_s24 = smov 0   ;;  %s1388_s25 = smov 0  }
   0x4   :  { %s1390_s26 = smov 0   ;;  %s1392_s27 = smov 0  }
   0x5   :  { %s1394_s28 = smov 0   ;;  %s1396_s29 = smov 0  }
   0x6 LB: > { %s31_s30 = sadd.s32 1, %s1328_s28  ;;  %s109_s8 = sadd.s32 1, %s1320_s26  ;;  %s1332_s29 = sphi %s1396_s29, %s22_s29   ;;  %s1328_s28 = sphi %s1394_s28, %s1628_s28   ;;  %s1324_s27 = sphi %s1392_s27, %s1627_s27   ;;  %s1320_s26 = sphi %s1390_s26, %s1626_s26   ;;  %s1316_s25 = sphi %s1388_s25, %s1625_s25   ;;  %s1312_s24 = sphi %s1386_s24, %s1624_s24  }
   0x7   : > { %p32_p0 = scmp.ge.s32.totalorder %s31_s30, 2  ;;  %p116_p1 = scmp.ne.s32.totalorder %s1320_s26, %s1316_s25 }
   0x8   : > { %p117_p2 = scmp.eq.s32.totalorder %s1332_s29, 0  ;;  %p1053_p5 = scmp.lt.s32.totalorder %s1332_s29, 2 }
   0x9   : > { %s1630_s30 = smov (%p32_p0, %s31_s30), 0  ;;  %s270_s11 = sand.u32 1, %s1332_s29  }
   0xa   : > { %p1423_p3 = por %p117_p2, %p116_p1  ;;  %s106_s10 = ssub.s32 %s1328_s28, %s1630_s30 }
   0xb   : > { %p107_p4 = scmp.eq.s32.totalorder %s106_s10, 0  ;;  %s272_s12 = sand.u32 1, %s1320_s26  }
   0xc   : > { %s1435_s14 = sshll.u32 %s272_s12, 7  ;;  %s998_s15 = sshll.u32 %s1328_s28, 7 }
   0xd   : > { %s1433_s13 = scalar_select %p107_p4, %s1320_s26, %s109_s8  }
   0xe   : > { %s280_s18 = scalar_lea.hbm %s1611_s3, %s998_s15  ;;  %s274_s19 = scalar_lea.vmem [#allocation6], %s1435_s14 }
   0xf   : > { %s281_s20 = sshll.u32 %s274_s19, 4  ;;  %p1444_p6 = pnand %p1053_p5, %p1423_p3  ;;  %s282_s20 = int_to_ptr.vmem [resolvable:$true] %s281_s20 }
  0x10   : > { %s1448_s22 = scalar_lea.sflag [#allocation7], %s270_s11  ;;  %s1181_s23 = scalar_lea.vmem %s282_s20, 2048 }
  0x11   : > { %p1617_p7 = pneg %p1444_p6  ;;  %p1182_p8 = scmp.ne.s32.totalorder %s282_s20, %s1181_s23 }
  0x12   : > { %s1334_s8 = smov [#allocation6]  }
  0x13   : > { %p1184_p9 = pnand %p1182_p8, %p1617_p7  ;;  %s1186_s10 = sshll.u32 %s1334_s8, 4  ;;  %s1187_s10 = int_to_ptr.vmem [resolvable:$false] %s1186_s10 }
  0x14   : > { %s1188_s9 = scalar_lea.vmem %s1187_s10, 4096  ;;  %p1189_p11 = scmp.lt.s32.totalorder %s282_s20, %s1187_s10 }
  0x15   : > { %p1185_p10 = pneg %p1184_p9  ;;  %p1190_p12 = scmp.lt.s32.totalorder %s1188_s9, %s1181_s23 }
  0x17   : > { %p1191_p13 = por %p1190_p12, %p1189_p11 }
  0x19   : > { %p1192_p0 = pnand %p1191_p13, %p1185_p10 }
  0x1b   : > { %1195 = shalt.err (!%p1192_p0)
}
  0x1c   : > { %s1335_s12 = smov 256   ;;  %s1616_s11 = smov 128  }
  0x1d   : > { %s1337_s15 = smov 8   ;;  %s1461_s16 = sadd.s32 4294967295, %s1332_s29  }
  0x1e   : > { %1048 = dma.hbm_to_vmem [thread:$0]  (!%p1444_p6), %s280_s18, 2048, %s282_s20, %s1448_s22, %s1335_s12, %s1616_s11, %s1337_s15  }
  0x1f   : > { %p122_p1 = scmp.ne.s32.totalorder %s1316_s25, %s1312_s24  ;;  %p123_p2 = scmp.eq.s32.totalorder %s1461_s16, 0 }
  0x20   : > { %p941_p3 = scmp.ge.s32.totalorder %s1332_s29, 1  ;;  %p232_p4 = scmp.lt.s32.totalorder %s1332_s29, 3 }
  0x21   : > { %p1470_p5 = por %p123_p2, %p122_p1  ;;  %s1338_s18 = smov [#allocation3]  }
  0x22   : > { %p1474_p8 = pnand %p941_p3, %p232_p4  ;;  %s247_s20 = sshll.u32 %s1338_s18, 4  ;;  %s248_s20 = int_to_ptr.vmem [resolvable:$true] %s247_s20 }
  0x23   : > { %s999_s23 = sshll.u32 %s1328_s28, 11  ;;  %s303_s9 = scalar_lea.vmem [#allocation8], %s1435_s14 }
  0x24   : > { %p1041_p9 = pneg %p1474_p8  ;;  %s1484_s10 = scalar_lea.hbm %s1613_s5, %s999_s23 }
  0x25   : > { %s310_s12 = sshll.u32 %s303_s9, 4  ;;  %s1207_s11 = scalar_lea.vmem %s248_s20, 256  ;;  %s1489_s12 = int_to_ptr.vmem [resolvable:$true] %s310_s12 }
  0x26   : > { %p1042_p10 = pnand %p1041_p9, %p123_p2  ;;  %p1208_p12 = scmp.ne.s32.totalorder %s248_s20, %s1207_s11 }
  0x27   : > { %p1215_p1 = scmp.lt.s32.totalorder %s248_s20, %s248_s20  ;;  %p1216_p3 = scmp.lt.s32.totalorder %s1207_s11, %s1207_s11 }
  0x28   : > { %p1198_p11 = pneg %p1042_p10 }
  0x29   : > { %p1217_p4 = por %p1216_p3, %p1215_p1 }
  0x2a   : > { %p1210_p13 = pnand %p1208_p12, %p1198_p11 }
  0x2c   : > { %p1211_p0 = pneg %p1210_p13 }
  0x2e   : > { %p1218_p7 = pnand %p1217_p4, %p1211_p0 }
  0x30   : > { %1221 = shalt.err (!%p1218_p7)
}
  0x31   : > { %s1622_s18 = smov 128   ;;  %s1235_s24 = scalar_lea.vmem %s1489_s12, 2048 }
  0x32   : > { %1044 = dma.hbm_to_vmem [thread:$0]  (!%p1042_p10), %s1608_s0, 256, %s248_s20, [#allocation4], %s1622_s18, %s1622_s18, %s1337_s15  }
  0x33   : > { %p1236_p9 = scmp.ne.s32.totalorder %s1489_s12, %s1235_s24  ;;  %p1623_p11 = pneg %p1444_p6 }
  0x34   : > { %s1339_s11 = smov [#allocation8]  }
  0x35   : > { %p1238_p12 = pnand %p1236_p9, %p1623_p11  ;;  %s1240_s8 = sshll.u32 %s1339_s11, 4  ;;  %s1241_s8 = int_to_ptr.vmem [resolvable:$false] %s1240_s8 }
  0x36   : > { %s1242_s9 = scalar_lea.vmem %s1241_s8, 4096  ;;  %p1243_p7 = scmp.lt.s32.totalorder %s1489_s12, %s1241_s8 }
  0x37   : > { %p1239_p13 = pneg %p1238_p12  ;;  %p1244_p0 = scmp.lt.s32.totalorder %s1242_s9, %s1235_s24 }
  0x39   : > { %p1245_p1 = por %p1244_p0, %p1243_p7 }
  0x3b   : > { %p1246_p3 = pnand %p1245_p1, %p1239_p13 }
  0x3d   : > { %1249 = shalt.err (!%p1246_p3)
}
  0x3e   : > { %s1340_s23 = smov 64   ;;  %s1341_s15 = smov 4  }
  0x3f   : > { %1051 = dma.hbm_to_vmem [thread:$0]  (!%p1444_p6), %s1484_s10, 2048, %s1489_s12, %s1448_s22, %s1340_s23, %s1340_s23, %s1341_s15  }
  0x40   : > { %322 = sbr.rel (%p1474_p8) target bundleno = 872 (0x368), region = 48 }
  0x45   : > { %1299 = dma.done.wait (%p123_p2), [#allocation4], 256  }
  0x46   : > { %1301 = vsyncadd (%p123_p2), [#allocation4], 4294967040  ;;  %s328_s20 = sand.u32 1, %s1461_s16   ;;  %s330_s18 = sand.u32 1, %s1316_s25  }
  0x47   : > { %s952_s14 = sshll.u32 %s330_s18, 7  ;;  %s329_s24 = scalar_lea.sflag [#allocation7], %s328_s20 }
  0x48   : > { %s1516_s11 = scalar_lea.vmem [#allocation6], %s952_s14 }
  0x49   : > { %1303 = dma.done.wait (%p1470_p5), %s329_s24, 4096  }
  0x4a   : > { %1305 = vsyncadd (%p1470_p5), %s329_s24, 4294963200  ;;  %s954_s21 = sshll.u32 %s1324_s27, 1  ;;  %s1529_s12 = scalar_lea.vmem [#allocation8], %s952_s14 }
  0x4b   : > { %p379_p6 = scmp.lt.s32.totalorder %s954_s21, 3  ;;  %p955_p2 = scmp.ne.s32.totalorder %s1324_s27, 0 }
  0x4d   : > { %s1632_s21 = smov (!%p379_p6, %s954_s21), 3  ;;  %389 = sbr.rel (%p955_p2) target bundleno = 396 (0x18c), region = 64 }
  0x4e   : > { %s381_s10 = scalar_lea.vmem %s1612_s4, %s1632_s21 }
  0x52   : > { %v390_v0 = vld [vmem:[#allocation3] sm:$0xff]  ;;  %v391_v1 = vld [vmem:[#allocation3 + $0x8] sm:$0xff]  ;;  %v960_v10 = vld [vmem:[%s1614_s6] ss:$0 sm:$0xff] }
  0x53   : > { %392 = vadd.xlane.f32.xlu0 %v390_v0  ;;  %450 = vst [vmem:[#allocation9] sm:$0xff] %v960_v10  ;;  %451 = vst [vmem:[#allocation9 + $0x8] sm:$0xff] %v960_v10  ;;  %v956_v19 = vld [vmem:[%s1609_s1] ss:$0 sm:$0xff] }
  0x54   : > { %v957_v23 = vld [vmem:[%s1610_s2] ss:$0 sm:$0xff] }
  0x57   : > { %394 = vadd.xlane.f32.xlu0 %v391_v1 }
  0xdc   : > { %v393_v2 = vpop.xlane.xlu0 %392 }
  0xdd   : > { %v397_v3 = vmul.f32 0.0078125, %v393_v2 }
  0xdf   : > { %v399_v4 = vsub.f32 %v390_v0, %v397_v3 }
  0xe0   : > { %v395_v5 = vpop.xlane.xlu0 %394 }
  0xe1   : > { %v398_v6 = vmul.f32 0.0078125, %v395_v5  ;;  %v401_v7 = vmul.f32 %v399_v4, %v399_v4 }
  0xe3   : > { %v400_v8 = vsub.f32 %v391_v1, %v398_v6  ;;  %403 = vadd.xlane.f32.xlu1 %v401_v7 }
  0xe5   : > { %v402_v9 = vmul.f32 %v400_v8, %v400_v8 }
  0xe7   : > { %405 = vadd.xlane.f32.xlu1 %v402_v9 }
 0x16c   : > { %v404_v11 = vpop.xlane.xlu1 %403 }
 0x16d   : > { %v407_v12 = vmul.f32 0.0078125, %v404_v11 }
 0x16f   : > { %v409_v13 = vadd.f32 1e-05, %v407_v12 }
 0x170   : > { %v406_v14 = vpop.xlane.xlu1 %405 }
 0x171   : > { %1115 = vrsqrt.f32 %v409_v13  ;;  %v408_v15 = vmul.f32 0.0078125, %v406_v14 }
 0x173   : > { %v410_v16 = vadd.f32 1e-05, %v408_v15 }
 0x175   : > { %1117 = vrsqrt.f32 %v410_v16 }
 0x17e   : > { %v1116_v17 = vpop.eup %1115 }
 0x17f   : > { %v413_v18 = vmul.f32 %v1116_v17, %v399_v4 }
 0x181   : > { %v422_v21 = vmul.f32 %v956_v19, %v413_v18 }
 0x182   : > { %v1118_v20 = vpop.eup %1117 }
 0x183   : > { %v414_v22 = vmul.f32 %v1118_v20, %v400_v8  ;;  %v431_v25 = vadd.f32 %v957_v23, %v422_v21 }
 0x185   : > { %v423_v24 = vmul.f32 %v956_v19, %v414_v22 }
 0x187   : > { %v432_v26 = vadd.f32 %v957_v23, %v423_v24 }
 0x189   : > { %v1005_v27 = vpack.c.bf16 %v432_v26, %v431_v25 }
 0x18b   : > { %1006 = vst [vmem:[#allocation2] sm:$0xff] %v1005_v27  }
 0x18c PF: > { %v1119_v28 = vld [vmem:[%s1516_s11 + $0x74] ss:$8 sps:$4 sm:$0xff]   ;;  %v1121_v29 = vld [vmem:[%s1516_s11 + $0x70] ss:$8 sps:$4 sm:$0xff]   ;;  %v1342_v30 = vmov 0   ;;  %v1148_v50 = vld [vmem:[%s1529_s12 + $0x68] sm:$0xff]   ;;  %v472_v62 = vlaneseq }
 0x18d   : > { %600 = vmatprep.mubr.bf16.mxu0 %v1342_v30  ;;  %568 = vmatprep.subr.bf16.mxu0 %v1119_v28  ;;  %v1122_v31 = vld [vmem:[%s1516_s11 + $0x64] ss:$8 sps:$4 sm:$0xff]   ;;  %v1124_v32 = vld [vmem:[%s1516_s11 + $0x60] ss:$8 sps:$4 sm:$0xff]   ;;  %v1125_v33 = vld [vmem:[%s1516_s11 + $0x54] ss:$8 sps:$4 sm:$0xff]  }
 0x18e   : > { %569 = vmatpush1.bf16.msra.mxu0 %v1121_v29  ;;  %v1127_v34 = vld [vmem:[%s1516_s11 + $0x50] ss:$8 sps:$4 sm:$0xff]   ;;  %v1128_v35 = vld [vmem:[%s1516_s11 + $0x44] ss:$8 sps:$4 sm:$0xff]   ;;  %v1130_v36 = vld [vmem:[%s1516_s11 + $0x40] ss:$8 sps:$4 sm:$0xff]  }
 0x18f   : > { %570 = vmatprep.subr.bf16.mxu0 %v1122_v31  ;;  %v1131_v37 = vld [vmem:[%s1516_s11 + $0x34] ss:$8 sps:$4 sm:$0xff]   ;;  %v1133_v38 = vld [vmem:[%s1516_s11 + $0x30] ss:$8 sps:$4 sm:$0xff]   ;;  %v1134_v39 = vld [vmem:[%s1516_s11 + $0x24] ss:$8 sps:$4 sm:$0xff]  }
 0x190   : > { %v1136_v40 = vld [vmem:[%s1516_s11 + $0x20] ss:$8 sps:$4 sm:$0xff]   ;;  %v1137_v41 = vld [vmem:[%s1516_s11 + $0x14] ss:$8 sps:$4 sm:$0xff]   ;;  %v1139_v42 = vld [vmem:[%s1516_s11 + $0x10] ss:$8 sps:$4 sm:$0xff]  }
 0x191   : > { %v1140_v43 = vld [vmem:[%s1516_s11 + $0x4] ss:$8 sps:$4 sm:$0xff]   ;;  %v1142_v44 = vld [vmem:[%s1516_s11] ss:$8 sps:$4 sm:$0xff]   ;;  %v1144_v46 = vld [vmem:[%s1529_s12 + $0x78] sm:$0xff]   ;;  %v473_v63 = vshrl.u32 %v472_v62, 7 }
 0x192   : > { %571 = vmatpush1.bf16.msra.mxu0 %v1124_v32  ;;  %v1143_v45 = vld [vmem:[#allocation2] sm:$0xff]   ;;  %v1145_v47 = vld [vmem:[%s1529_s12 + $0x38] sm:$0xff]   ;;  %1007 = vmatprep.subr.bf16.mxu1 %v1144_v46  ;;  %v1146_v48 = vld [vmem:[%s1529_s12 + $0x70] sm:$0xff]   ;;  %s1343_s14 = smov [#allocation9]   ;;  %p1055_p5 = scmp.eq.s32.totalorder %s1461_s16, 1 }
 0x193   : > { %572 = vmatprep.subr.bf16.mxu0 %v1125_v33  ;;  %1008 = vmatpush3.bf16.msra.mxu1 %v1145_v47  ;;  %v1147_v49 = vld [vmem:[%s1529_s12 + $0x30] sm:$0xff]   ;;  %v1149_v51 = vld [vmem:[%s1529_s12 + $0x28] sm:$0xff]   ;;  %v1150_v52 = vld [vmem:[%s1529_s12 + $0x60] sm:$0xff]   ;;  %v474_v0 = vsub.s32 0, %v473_v63  ;;  %v478_v2 = vsub.s32 1, %v473_v63  ;;  %s833_s24 = sshll.u32 %s1343_s14, 4  ;;  %s834_s24 = int_to_ptr.vmem [resolvable:$true] %s833_s24 }
 0x194   : > { %1009 = vmatprep.subr.bf16.mxu1 %v1146_v48  ;;  %v1151_v53 = vld [vmem:[%s1529_s12 + $0x20] sm:$0xff]   ;;  %v1152_v54 = vld [vmem:[%s1529_s12 + $0x58] sm:$0xff]   ;;  %v1154_v56 = vld [vmem:[%s1529_s12 + $0x50] sm:$0xff]   ;;  %s1250_s11 = scalar_lea.vmem %s834_s24, 256  ;;  %p1257_p9 = scmp.lt.s32.totalorder %s834_s24, %s834_s24 }
 0x195   : > { %v1153_v55 = vld [vmem:[%s1529_s12 + $0x18] sm:$0xff]   ;;  %v1155_v57 = vld [vmem:[%s1529_s12 + $0x10] sm:$0xff]   ;;  %v1156_v58 = vld [vmem:[%s1529_s12 + $0x48] sm:$0xff]   ;;  %p1251_p8 = scmp.ne.s32.totalorder %s834_s24, %s1250_s11  ;;  %p1258_p11 = scmp.lt.s32.totalorder %s1250_s11, %s1250_s11 }
 0x196   : > { %573 = vmatpush1.bf16.msra.mxu0 %v1127_v34  ;;  %v1157_v59 = vld [vmem:[%s1529_s12 + $0x8] sm:$0xff]   ;;  %v1158_v60 = vld [vmem:[%s1529_s12 + $0x40] sm:$0xff]  }
 0x197   : > { %574 = vmatprep.subr.bf16.mxu0 %v1128_v35  ;;  %1010 = vmatpush3.bf16.msra.mxu1 %v1147_v49  ;;  %v1159_v61 = vld [vmem:[%s1529_s12] sm:$0xff]   ;;  %v470_v1 = vld [vmem:[%s381_s10] sm:$0x3]  ;;  %p1252_p10 = pnand %p1251_p8, %p1055_p5  ;;  %p1259_p12 = por %p1258_p11, %p1257_p9 }
 0x198   : > { %1011 = vmatprep.subr.bf16.mxu1 %v1148_v50  ;;  %v475_v3 = vrot.slane %v470_v1, %v474_v0  ;;  %v479_v4 = vrot.slane %v470_v1, %v478_v2 }
 0x199   : > { %p1253_p4 = pneg %p1252_p10 }
 0x19a   : > { %575 = vmatpush1.bf16.msra.mxu0 %v1130_v36 }
 0x19b   : > { %576 = vmatprep.subr.bf16.mxu0 %v1131_v37  ;;  %1012 = vmatpush3.bf16.msra.mxu1 %v1149_v51  ;;  %p1260_p13 = pnand %p1259_p12, %p1253_p4 }
 0x19c   : > { %1013 = vmatprep.subr.bf16.mxu1 %v1150_v52  ;;  %v647_v52 = vld [vmem:[#allocation9] sm:$0xff] }
 0x19e   : > { %577 = vmatpush1.bf16.msra.mxu0 %v1133_v38 }
 0x19f   : > { %578 = vmatprep.subr.bf16.mxu0 %v1134_v39  ;;  %1014 = vmatpush3.bf16.msra.mxu1 %v1151_v53 }
 0x1a0   : > { %1015 = vmatprep.subr.bf16.mxu1 %v1152_v54 }
 0x1a2   : > { %579 = vmatpush1.bf16.msra.mxu0 %v1136_v40 }
 0x1a3   : > { %580 = vmatprep.subr.bf16.mxu0 %v1137_v41  ;;  %1016 = vmatpush3.bf16.msra.mxu1 %v1153_v55 }
 0x1a4   : > { %1017 = vmatprep.subr.bf16.mxu1 %v1154_v56 }
 0x1a6   : > { %581 = vmatpush1.bf16.msra.mxu0 %v1139_v42 }
 0x1a7   : > { %582 = vmatprep.subr.bf16.mxu0 %v1140_v43  ;;  %1018 = vmatpush3.bf16.msra.mxu1 %v1155_v57  ;;  %v648_v57 = vld [vmem:[#allocation9 + $0x8] sm:$0xff] }
 0x1a8   : > { %1019 = vmatprep.subr.bf16.mxu1 %v1156_v58 }
 0x1aa   : > { %583 = vmatpush1.bf16.msra.mxu0 %v1142_v44 }
 0x1ab   : > { %1020 = vmatpush3.bf16.msra.mxu1 %v1157_v59 }
 0x1ac   : > { %1021 = vmatprep.subr.bf16.mxu1 %v1158_v60 }
 0x1ad   : > { %601 = vmatmul.mubr.bf16.vlgmr.msra.gmra.mxu0 %v1143_v45 }
 0x1af   : > { %1022 = vmatpush3.bf16.msra.mxu1 %v1159_v61 }
 0x26d   : > { %v602_v5 = vpop.f32.mrf.mxu0 }
 0x26e   : > { %v603_v6 = vadd.f32 %v602_v5, %v475_v3 }
 0x26f   : > { %v604_v7 = vpop.f32.mrf.mxu0 }
 0x270   : > { %v611_v8 = vmul.f32 %v603_v6, %v603_v6  ;;  %v605_v9 = vadd.f32 %v604_v7, %v479_v4 }
 0x271   : > { %v606_v10 = vpop.f32.mrf.mxu0 }
 0x272   : > { %v615_v11 = vmul.f32 %v611_v8, %v603_v6  ;;  %v612_v12 = vmul.f32 %v605_v9, %v605_v9  ;;  %v607_v13 = vadd.f32 %v606_v10, %v475_v3 }
 0x273   : > { %v608_v14 = vpop.f32.mrf.mxu0 }
 0x274   : > { %v619_v15 = vmul.f32 0.044715, %v615_v11  ;;  %v616_v16 = vmul.f32 %v612_v12, %v605_v9  ;;  %v613_v17 = vmul.f32 %v607_v13, %v607_v13  ;;  %v609_v18 = vadd.f32 %v608_v14, %v479_v4 }
 0x276   : > { %v623_v19 = vadd.f32 %v619_v15, %v603_v6  ;;  %v620_v20 = vmul.f32 0.044715, %v616_v16  ;;  %v617_v21 = vmul.f32 %v613_v17, %v607_v13  ;;  %v614_v22 = vmul.f32 %v609_v18, %v609_v18 }
 0x278   : > { %v627_v23 = vmul.f32 0.7978846, %v623_v19  ;;  %v624_v24 = vadd.f32 %v620_v20, %v605_v9  ;;  %v621_v25 = vmul.f32 0.044715, %v617_v21  ;;  %v618_v26 = vmul.f32 %v614_v22, %v609_v18 }
 0x27a   : > { %v625_v27 = vadd.f32 %v621_v25, %v607_v13  ;;  %v622_v28 = vmul.f32 0.044715, %v618_v26  ;;  %v628_v29 = vmul.f32 0.7978846, %v624_v24  ;;  %1160 = vtanh.f32 %v627_v23 }
 0x27c   : > { %v629_v30 = vmul.f32 0.7978846, %v625_v27  ;;  %v626_v31 = vadd.f32 %v622_v28, %v609_v18  ;;  %1162 = vtanh.f32 %v628_v29 }
 0x27e   : > { %1164 = vtanh.f32 %v629_v30  ;;  %v630_v32 = vmul.f32 0.7978846, %v626_v31 }
 0x280   : > { %1166 = vtanh.f32 %v630_v32 }
 0x287   : > { %v1161_v33 = vpop.eup %1160 }
 0x288   : > { %v635_v37 = vadd.f32 1.0, %v1161_v33 }
 0x289   : > { %v1163_v34 = vpop.eup %1162 }
 0x28a   : > { %v636_v35 = vadd.f32 1.0, %v1163_v34  ;;  %v639_v43 = vmul.f32 0.5, %v635_v37 }
 0x28b   : > { %v1165_v36 = vpop.eup %1164 }
 0x28c   : > { %v637_v38 = vadd.f32 1.0, %v1165_v36  ;;  %v640_v41 = vmul.f32 0.5, %v636_v35  ;;  %v643_v48 = vmul.f32 %v639_v43, %v603_v6 }
 0x28d   : > { %v1167_v39 = vpop.eup %1166 }
 0x28e   : > { %v638_v40 = vadd.f32 1.0, %v1167_v39  ;;  %v641_v42 = vmul.f32 0.5, %v637_v38  ;;  %v644_v46 = vmul.f32 %v640_v41, %v605_v9 }
 0x290   : > { %v642_v44 = vmul.f32 0.5, %v638_v40  ;;  %v645_v45 = vmul.f32 %v641_v42, %v607_v13 }
 0x292   : > { %v646_v47 = vmul.f32 %v642_v44, %v609_v18  ;;  %v649_v50 = vpack.c.bf16 %v645_v45, %v643_v48 }
 0x294   : > { %v650_v49 = vpack.c.bf16 %v646_v47, %v644_v46 }
 0x296   : > { %811 = vmatprep.mubr.bf16.mxu1 %v650_v49 }
 0x297   : > { %812 = vmatmul.mubr.bf16.vlgmr.msra.gmra.mxu1 %v649_v50 }
 0x357   : > { %v1023_v51 = vpop.f32.mrf.mxu1 }
 0x359   : > { %v1024_v53 = vpop.f32.mrf.mxu1 }
 0x35a   : > { %v1025_v54 = vadd.f32 %v1024_v53, %v1023_v51 }
 0x35b   : > { %v1026_v55 = vpop.f32.mrf.mxu1 }
 0x35c   : > { %v820_v56 = vadd.f32 %v1025_v54, %v647_v52 }
 0x35d   : > { %v1027_v58 = vpop.f32.mrf.mxu1 }
 0x35e   : > { %822 = vst [vmem:[#allocation9] sm:$0xff] %v820_v56  ;;  %v1028_v59 = vadd.f32 %v1027_v58, %v1026_v55 }
 0x360   : > { %v821_v60 = vadd.f32 %v1028_v59, %v648_v57 }
 0x362   : > { %823 = vst [vmem:[#allocation9 + $0x8] sm:$0xff] %v821_v60 }
 0x363   : > { %1263 = shalt.err (!%p1260_p13)
}
 0x364   : > { %s1344_s21 = smov 128   ;;  %s1345_s22 = smov 8  }
 0x365   : > { %1038 = dma.vmem_to_hbm [thread:$0]  (%p1055_p5), %s834_s24, 256, %s1615_s7, [#allocation5], %s1344_s21, %s1344_s21, %s1345_s22  }
 0x366   : > { %1307 = dma.done.wait (%p1055_p5), [#allocation5], 256  }
 0x367   : > { %1309 = vsyncadd (%p1055_p5), [#allocation5], 4294967040 }
 0x368 PF: > { %s22_s29 = sadd.s32 1, %s1332_s29   ;;  %s1624_s24 = smov %s1316_s25 }
 0x369   : > { %p19_p7 = scmp.ge.s32.totalorder %s22_s29, 4   ;;  %s1625_s25 = smov %s1320_s26 }
 0x36a   : > { %s1626_s26 = smov %s1433_s13  ;;  %s1627_s27 = smov %s1328_s28 }
 0x36b   : > { %s1628_s28 = smov %s1630_s30  ;;  %21 = sbr.rel (!%p19_p7) target bundleno = 6 (0x6), region = 110 }
 0x370   :  { %849 = vsyncpa [#allocation4], 1 }
 0x371   :  { %851 = vsyncpa [#allocation4 + $0x1], 1 }
 0x372   :  { %852 = vsyncpa [#allocation7], 1 }
 0x373   :  { %854 = vsyncpa [#allocation7 + $0x1], 1 }
 0x374   :  { %855 = vsyncpa [#allocation5], 1 }
 0x375   :  { %857 = vsyncpa [#allocation5 + $0x1], 1 }

</bundles_post_ra>
